<compile_context>
chip_gen: v6e
topology: v6e:2x2x1
jax: 0.10.0
libtpu: 0.0.40
codegen_flags: <defaults>
</compile_context>

<pallas_src>
import jax
import jax.numpy as jnp
from jax.experimental import pallas as pl
from jax.experimental.pallas import tpu as pltpu


def _shared_kernel(x_ref, w_ref, b_ref, o_ref):
    # x_ref: (1, S, C)   w_ref: (P, S)   b_ref: (P, 1)   o_ref: (1, P, C)
    x = x_ref[0]                                                   # (S, C)
    acc = jnp.dot(w_ref[...], x, preferred_element_type=jnp.float32)  # (P, C) on MXU
    o_ref[0] = (acc + b_ref[...].astype(jnp.float32)).astype(o_ref.dtype)


def _indiv_kernel(x_ref, w_ref, b_ref, o_ref):
    # x_ref: (1, S, C)   w_ref: (S, P, C)   b_ref: (P, C)   o_ref: (1, P, C)
    # Per-channel contraction over seq: y[p, c] = sum_s x[s, c] * w[s, p, c] + b[p, c].
    # Channels live on the lane axis; the reduction is a VPU multiply-accumulate
    # (seq_len is a static trace-time constant, so the loop fully unrolls).
    x = x_ref[0].astype(jnp.float32)                # (S, C)
    w = w_ref[...].astype(jnp.float32)              # (S, P, C)
    acc = b_ref[...].astype(jnp.float32)            # (P, C)
    for s in range(w.shape[0]):
        acc = acc + x[s:s + 1, :] * w[s]            # (1,C) * (P,C) -> (P,C)
    o_ref[0] = acc.astype(o_ref.dtype)


def linear_forecast(x, weight, bias, individual: bool):
    """x: [B, seq_len, C]; weight: [Cw, pred_len, seq_len]; bias: [Cw, pred_len]
    where Cw == C if individual else 1. Returns [B, pred_len, C]."""
    B, seq_len, C = x.shape
    Cw, pred_len, _ = weight.shape

    out_shape = jax.ShapeDtypeStruct((B, pred_len, C), x.dtype)
    cparams = pltpu.CompilerParams(dimension_semantics=("parallel",))

    if individual:
        assert Cw == C
        # One-time parameter re-layout (tiny vs. activation traffic):
        w_t = jnp.transpose(weight, (2, 1, 0))      # (S, P, C)
        b_t = jnp.transpose(bias, (1, 0))           # (P, C)
        return pl.pallas_call(
            _indiv_kernel,
            out_shape=out_shape,
            grid=(B,),
            in_specs=[
                pl.BlockSpec((1, seq_len, C), lambda b: (b, 0, 0)),
                pl.BlockSpec((seq_len, pred_len, C), lambda b: (0, 0, 0)),  # resident
                pl.BlockSpec((pred_len, C), lambda b: (0, 0)),              # resident
            ],
            out_specs=pl.BlockSpec((1, pred_len, C), lambda b: (b, 0, 0)),
            compiler_params=cparams,
        )(x, w_t, b_t)
    else:
        assert Cw == 1
        w2 = weight[0]                              # (P, S)
        b2 = bias.reshape(pred_len, 1)              # (P, 1) -> broadcasts over C
        return pl.pallas_call(
            _shared_kernel,
            out_shape=out_shape,
            grid=(B,),
            in_specs=[
                pl.BlockSpec((1, seq_len, C), lambda b: (b, 0, 0)),
                pl.BlockSpec((pred_len, seq_len), lambda b: (0, 0)),        # resident
                pl.BlockSpec((pred_len, 1), lambda b: (0, 0)),              # resident
            ],
            out_specs=pl.BlockSpec((1, pred_len, C), lambda b: (b, 0, 0)),
            compiler_params=cparams,
        )(x, w2, b2)


def init_params(key, seq_len, pred_len, enc_in, individual):
    """Deterministic nn.Linear-style init: U(-1/sqrt(seq_len), 1/sqrt(seq_len))."""
    Cw = enc_in if individual else 1
    kw, kb = jax.random.split(key)
    bound = 1.0 / jnp.sqrt(jnp.float32(seq_len))
    weight = jax.random.uniform(kw, (Cw, pred_len, seq_len), jnp.float32, -bound, bound)
    bias = jax.random.uniform(kb, (Cw, pred_len), jnp.float32, -bound, bound)
    return weight, bias


if __name__ == "__main__":
    B, seq_len, pred_len, enc_in = 2, 8, 16, 4

    key = jax.random.PRNGKey(0)
    kx, kp1, kp2 = jax.random.split(key, 3)
    x = jax.random.normal(kx, (B, seq_len, enc_in), jnp.float32)

    # Shared (individual=False) case
    w_s, b_s = init_params(kp1, seq_len, pred_len, enc_in, individual=False)
    y_shared = linear_forecast(x, w_s, b_s, individual=False)
    jax.block_until_ready(y_shared)

    # Per-channel (individual=True) case
    w_i, b_i = init_params(kp2, seq_len, pred_len, enc_in, individual=True)
    y_indiv = linear_forecast(x, w_i, b_i, individual=True)
    jax.block_until_ready(y_indiv)

    # Reference check against plain JAX (same math as the PyTorch module)
    ref_shared = jnp.einsum("bsc,ps->bpc", x, w_s[0]) + b_s[0][None, :, None]
    ref_indiv = (
        jnp.einsum("bsc,cps->bpc", x, w_i) + jnp.transpose(b_i, (1, 0))[None]
    )
    assert y_shared.shape == (B, pred_len, enc_in)
    assert y_indiv.shape == (B, pred_len, enc_in)
    assert jnp.allclose(y_shared, ref_shared, atol=1e-5)
    assert jnp.allclose(y_indiv, ref_indiv, atol=1e-5)

    print("KERNEL_OK")
</pallas_src>

<mosaic_0001>
module attributes {stable_mosaic.version = 11 : i64} {
  func.func @_shared_kernel(%arg0: i32, %arg1: memref<1x8x4xf32, #tpu.memory_space<vmem>>, %arg2: memref<16x8xf32, #tpu.memory_space<vmem>>, %arg3: memref<16x1xf32, #tpu.memory_space<vmem>>, %arg4: memref<1x16x4xf32, #tpu.memory_space<vmem>>) attributes {dimension_semantics = [#tpu.dimension_semantics<parallel>], iteration_bounds = array<i64: 2>, scalar_prefetch = 0 : i64, scratch_operands = 0 : i64, tpu.core_type = #tpu.core_type<tc>, window_params = [{transform_indices = @transform_0, window_bounds = array<i64: 1, 8, 4>}, {pipeline_mode = #tpu.pipeline_mode<synchronous>, transform_indices = @transform_1, window_bounds = array<i64: 16, 8>}, {pipeline_mode = #tpu.pipeline_mode<synchronous>, transform_indices = @transform_2, window_bounds = array<i64: 16, 1>}, {transform_indices = @transform_3, window_bounds = array<i64: 1, 16, 4>}]} {
    %c0 = arith.constant 0 : index
    %c0_0 = arith.constant 0 : index
    %c0_1 = arith.constant 0 : index
    %0 = vector.load %arg1[%c0, %c0_0, %c0_1] : memref<1x8x4xf32, #tpu.memory_space<vmem>>, vector<1x8x4xf32>
    %1 = vector.shape_cast %0 : vector<1x8x4xf32> to vector<8x4xf32>
    %c0_2 = arith.constant 0 : index
    %c0_3 = arith.constant 0 : index
    %2 = vector.load %arg2[%c0_2, %c0_3] : memref<16x8xf32, #tpu.memory_space<vmem>>, vector<16x8xf32>
    %cst = arith.constant dense<0.000000e+00> : vector<16x4xf32>
    %3 = tpu.matmul %2, %1, %cst {dimension_numbers = #tpu.dot_dimension_numbers<[1], [0], [0], [1], [0, 0, 1, 1], [], []>} : vector<16x8xf32>, vector<8x4xf32>, vector<16x4xf32> -> vector<16x4xf32>
    %c0_4 = arith.constant 0 : index
    %c0_5 = arith.constant 0 : index
    %4 = vector.load %arg3[%c0_4, %c0_5] : memref<16x1xf32, #tpu.memory_space<vmem>>, vector<16x1xf32>
    %5 = vector.broadcast %4 : vector<16x1xf32> to vector<16x4xf32>
    %6 = arith.addf %3, %5 : vector<16x4xf32>
    %c0_6 = arith.constant 0 : index
    %c0_7 = arith.constant 0 : index
    %c0_8 = arith.constant 0 : index
    %7 = vector.load %arg4[%c0_6, %c0_7, %c0_8] : memref<1x16x4xf32, #tpu.memory_space<vmem>>, vector<1x16x4xf32>
    %8 = vector.shape_cast %7 : vector<1x16x4xf32> to vector<16x4xf32>
    %9 = vector.shape_cast %6 : vector<16x4xf32> to vector<1x16x4xf32>
    tpu.vector_store %arg4[%c0_6, %c0_7, %c0_8], %9 {strides = array<i32>} : memref<1x16x4xf32, #tpu.memory_space<vmem>>, vector<1x16x4xf32>,
    return
  }
  func.func @transform_0(%arg0: i32) -> (i32, i32, i32) {
    %c0_i32 = arith.constant 0 : i32
    %c0_i32_0 = arith.constant 0 : i32
    %c0_i32_1 = arith.constant 0 : i32
    return %arg0, %c0_i32, %c0_i32_0 : i32, i32, i32
  }
  func.func @transform_1(%arg0: i32) -> (i32, i32) {
    %c0_i32 = arith.constant 0 : i32
    %c0_i32_0 = arith.constant 0 : i32
    %c0_i32_1 = arith.constant 0 : i32
    return %c0_i32, %c0_i32_0 : i32, i32
  }
  func.func @transform_2(%arg0: i32) -> (i32, i32) {
    %c0_i32 = arith.constant 0 : i32
    %c0_i32_0 = arith.constant 0 : i32
    %c0_i32_1 = arith.constant 0 : i32
    return %c0_i32, %c0_i32_0 : i32, i32
  }
  func.func @transform_3(%arg0: i32) -> (i32, i32, i32) {
    %c0_i32 = arith.constant 0 : i32
    %c0_i32_0 = arith.constant 0 : i32
    %c0_i32_1 = arith.constant 0 : i32
    return %arg0, %c0_i32, %c0_i32_0 : i32, i32, i32
  }
}

</mosaic_0001>

<bundles_post_ra>
// kernel: tpu_custom_call.1
= control target key start
LH: loop header
LB: loop body
LE: loop exit
PB: predicated region body
PF: predicated region fallthrough
CT: control target
= control target key end

     0   :  { %s383_s12 = smov 0   ;;  %s412_s0 = inlined_call_operand.vmem [shape: f32[2,8,4], index: 0, kind: input, shape index: {}]   ;;  %s413_s1 = inlined_call_operand.vmem [shape: f32[16,8], index: 1, kind: input, shape index: {}]   ;;  %s414_s2 = inlined_call_operand.vmem [shape: f32[16,1], index: 2, kind: input, shape index: {}]   ;;  %s415_s3 = inlined_call_operand.vmem [shape: f32[2,16,4], index: 3, kind: output, shape index: {}]  }
   0x1 LB: > { %s323_s13 = sadd.s32 4294967295, %s360_s12   ;;  %p327_p0 = scmp.ge.s32.totalorder %s360_s12, 1  ;;  %s360_s12 = sphi %s383_s12, %s13_s12  }
   0x2   : > { %p136_p1 = scmp.lt.s32.totalorder %s360_s12, 3 }
   0x4   : > { %p137_p2 = pnand %p327_p0, %p136_p1 }
   0x5   : > { %p159_p3 = scmp.lt.s32.totalorder (!%p137_p2), %s323_s13, 1 }
   0x6   : > { %140 = sbr.rel (%p137_p2) target bundleno = 215 (0xd7), region = 32 }
   0xb   : > { %v169_v0 = vld [vmem:[%s413_s1] sm:$0xff]  ;;  %vm183_vm0 = vcmask 64512   ;;  %v362_v2 = vmov 0   ;;  %s417_s13 = smov (!%p159_p3, %s323_s13), 1  ;;  %v172_v3 = vld [vmem:[%s414_s2 + $0x8] sm:$0xff]  ;;  %vm265_vm1 = vcmask 31744  }
   0xc   : > { %v171_v1 = vld [vmem:[%s414_s2] sm:$0xff]  ;;  %341 = vmatprep.mubr.msk.f32.mxu0 %vm183_vm0, %v169_v0  ;;  %353 = vset.pattern.permute.xlu0 %v362_v2  ;;  %s328_s20 = sshll.u32 %s417_s13, 3  ;;  %v170_v5 = vld [vmem:[%s413_s1 + $0x8] sm:$0xff]  ;;  %s335_s26 = sshll.u32 %s417_s13, 4 }
   0xd   : > { %175 = vperm.xlu0 %353, %v171_v1   ;;  %s162_s23 = scalar_lea.vmem %s412_s0, %s328_s20  ;;  %s167_s29 = scalar_lea.vmem %s415_s3, %s335_s26 }
   0xe   : > { %v168_v4 = vld [vmem:[%s162_s23] sm:$0xff] }
   0xf   : > { %339 = vmatprep.subr.mxu0 %v168_v4 }
  0x10   : > { %340 = vmatpush3.msra.mxu0 %v168_v4 }
  0x11   : > { %180 = vperm.xlu0 %353, %v172_v3   ;;  %342 = vmatmul.mubr.msk.f32.vlgmr.msra.gmra.mxu0 %vm183_vm0, %v170_v5 }
  0x88   : > { %v176_v6 = vpop.permute.xlu0 %175 }
  0x8c   : > { %v181_v7 = vpop.permute.xlu0 %180 }
  0xd1   : > { %v343_v8 = vpop.f32.mrf.mxu0 }
  0xd2   : > { %v262_v9 = vadd.f32 %v343_v8, %v181_v7 }
  0xd3   : > { %v256_v10 = vpop.f32.mrf.mxu0 }
  0xd4   : > { %267 = vst.msk [vmem:[%s167_s29 + $0x8] sm:$0xff] %vm265_vm1, %v262_v9  ;;  %v257_v11 = vadd.f32 %v256_v10, %v176_v6 }
  0xd6   : > { %266 = vst.msk [vmem:[%s167_s29] sm:$0xff] %vm265_vm1, %v257_v11 }
  0xd7 PF: > { %s13_s12 = sadd.s32 1, %s360_s12  }
  0xd8   : > { %p10_p4 = scmp.ge.s32.totalorder %s13_s12, 4  }
  0xda   :  { %12 = sbr.rel (!%p10_p4) target bundleno = 1 (0x1), region = 62 }

</bundles_post_ra>
